<compile_context>
chip_gen: v7x
topology: tpu7x:2x2x1
jax: 0.10.0
libtpu: 0.0.40
codegen_flags: <defaults>
</compile_context>

<pallas_src>
import jax
import jax.numpy as jnp
from jax.experimental import pallas as pl
from jax.experimental.pallas import tpu as pltpu


def _fused_conv_blocks_kernel(p_ref, w1_ref, b1_ref, w2_ref, b2_ref, o_ref):
    # p_ref : (48, TM)  fused 4x4-patch columns, M on the lane axis
    # w1_ref: (12, 48)  block-diagonal conv1 weights (4 offsets x 3 out-ch)
    # b1_ref: (12, 1)
    # w2_ref: (10, 12)  conv2 weights with columns reordered to (offset, ch)
    # b2_ref: (10, 1)
    # o_ref : (10, TM)
    y = jnp.dot(w1_ref[...], p_ref[...], preferred_element_type=jnp.float32)
    y = jnp.maximum(y + b1_ref[...], 0.0)      # conv1 + ReLU  (+abs == identity)
    z = jnp.dot(w2_ref[...], y, preferred_element_type=jnp.float32)
    z = jnp.maximum(z + b2_ref[...], 0.0)      # conv2 + ReLU
    o_ref[...] = z.astype(o_ref.dtype)


def conv_blocks_with_abs(x, params):
    """Full module forward.

    x      : (N, Cin, H, W) NCHW float32
    params : (w1 (3,Cin,2,2), b1 (3,), w2 (10,3,2,2), b2 (10,))  PyTorch layouts
    returns: (N, 10, H//4, W//4)
    """
    w1, b1, w2, b2 = params
    N, Cin, H, W = x.shape
    C1 = w1.shape[0]                       # 3
    C2 = w2.shape[0]                       # 10
    K1 = Cin * 4                           # conv1 patch size per offset (12)
    Ho2, Wo2 = (H // 2) // 2, (W // 2) // 2
    # PyTorch Conv2d(k=2, s=2) twice silently drops odd trailing rows/cols.
    x = x[:, :, : 4 * Ho2, : 4 * Wo2]
    M = N * Ho2 * Wo2

    # --- single-pass fused im2col: columns = disjoint 4x4 patches -----------
    # rows ordered (dh, dw, cin, kh, kw)  ==  (conv1 offset q, conv1 K index)
    p = x.reshape(N, Cin, Ho2, 2, 2, Wo2, 2, 2)
    p = p.transpose(3, 6, 1, 4, 7, 0, 2, 5)        # (dh, dw, cin, kh, kw, n, ho2, wo2)
    p = p.reshape(4 * K1, M)

    # --- weight re-packing (tiny, host side) --------------------------------
    w1_mat = w1.reshape(C1, K1)                               # cols (cin, kh, kw)
    w1_blk = jnp.kron(jnp.eye(4, dtype=w1.dtype), w1_mat)     # (12, 48) block-diag
    b1_col = jnp.tile(b1, 4).reshape(4 * C1, 1)               # rows (q, c1)
    w2_r = w2.transpose(0, 2, 3, 1).reshape(C2, 4 * C1)       # cols (q, c1)
    b2_col = b2.reshape(C2, 1)

    # --- tiling over M (lane axis), multiples of 128, <= 512 per step -------
    TM = min(512, ((M + 127) // 128) * 128)
    Mp = ((M + TM - 1) // TM) * TM
    if Mp > M:
        p = jnp.pad(p, ((0, 0), (0, Mp - M)))
    grid = (Mp // TM,)

    out = pl.pallas_call(
        _fused_conv_blocks_kernel,
        out_shape=jax.ShapeDtypeStruct((C2, Mp), x.dtype),
        grid=grid,
        in_specs=[
            pl.BlockSpec((4 * K1, TM), lambda i: (0, i)),       # patches (tiled)
            pl.BlockSpec((4 * C1, 4 * K1), lambda i: (0, 0)),   # W1 block-diag (resident)
            pl.BlockSpec((4 * C1, 1), lambda i: (0, 0)),        # b1
            pl.BlockSpec((C2, 4 * C1), lambda i: (0, 0)),       # W2 reordered
            pl.BlockSpec((C2, 1), lambda i: (0, 0)),            # b2
        ],
        out_specs=pl.BlockSpec((C2, TM), lambda i: (0, i)),
        compiler_params=pltpu.CompilerParams(
            dimension_semantics=("parallel",),
        ),
    )(p, w1_blk, b1_col, w2_r, b2_col)

    # back to NCHW
    return out[:, :M].reshape(C2, N, Ho2, Wo2).transpose(1, 0, 2, 3)


def init_params(key, conv_in_channels=3):
    k1, k2, k3, k4 = jax.random.split(key, 4)
    # Conv2d default-style init: U(-1/sqrt(fan_in), 1/sqrt(fan_in))
    fan1 = conv_in_channels * 2 * 2
    fan2 = 3 * 2 * 2                       # block2's true fan_in = block1 out ch * k*k
    bnd1 = 1.0 / jnp.sqrt(fan1)
    bnd2 = 1.0 / jnp.sqrt(fan2)
    w1 = jax.random.uniform(k1, (3, conv_in_channels, 2, 2), jnp.float32, -bnd1, bnd1)
    b1 = jax.random.uniform(k2, (3,), jnp.float32, -bnd1, bnd1)
    w2 = jax.random.uniform(k3, (10, 3, 2, 2), jnp.float32, -bnd2, bnd2)
    b2 = jax.random.uniform(k4, (10,), jnp.float32, -bnd2, bnd2)
    return (w1, b1, w2, b2)


def _reference(x, params):
    """Pure-JAX reference (lax conv) for correctness check."""
    w1, b1, w2, b2 = params
    dn = jax.lax.conv_dimension_numbers(x.shape, w1.shape, ("NCHW", "OIHW", "NCHW"))
    y = jax.lax.conv_general_dilated(x, w1, (2, 2), "VALID", dimension_numbers=dn)
    y = jnp.abs(jax.nn.relu(y + b1[None, :, None, None]))
    dn2 = jax.lax.conv_dimension_numbers(y.shape, w2.shape, ("NCHW", "OIHW", "NCHW"))
    z = jax.lax.conv_general_dilated(y, w2, (2, 2), "VALID", dimension_numbers=dn2)
    return jax.nn.relu(z + b2[None, :, None, None])


if __name__ == "__main__":
    key = jax.random.PRNGKey(0)
    kx, kp = jax.random.split(key)

    # Small deterministic input, NCHW like PyTorch: batch=2, channels=3, 16x16
    x = jax.random.normal(kx, (2, 3, 16, 16), dtype=jnp.float32)
    params = init_params(kp, conv_in_channels=3)

    fwd = jax.jit(conv_blocks_with_abs)
    out = jax.block_until_ready(fwd(x, params))

    assert out.shape == (2, 10, 4, 4), out.shape

    ref = jax.block_until_ready(_reference(x, params))
    assert jnp.allclose(out, ref, atol=1e-4, rtol=1e-4), "mismatch vs reference"

    print("KERNEL_OK")
</pallas_src>

<mosaic_0001>
module attributes {stable_mosaic.version = 11 : i64} {
  func.func @_fused_conv_blocks_kernel(%arg0: i32, %arg1: memref<48x128xf32, #tpu.memory_space<vmem>>, %arg2: memref<12x48xf32, #tpu.memory_space<vmem>>, %arg3: memref<12x1xf32, #tpu.memory_space<vmem>>, %arg4: memref<10x12xf32, #tpu.memory_space<vmem>>, %arg5: memref<10x1xf32, #tpu.memory_space<vmem>>, %arg6: memref<10x128xf32, #tpu.memory_space<vmem>>) attributes {dimension_semantics = [#tpu.dimension_semantics<parallel>], iteration_bounds = array<i64: 1>, scalar_prefetch = 0 : i64, scratch_operands = 0 : i64, tpu.core_type = #tpu.core_type<tc>, window_params = [{transform_indices = @transform_0, window_bounds = array<i64: 48, 128>}, {pipeline_mode = #tpu.pipeline_mode<synchronous>, transform_indices = @transform_1, window_bounds = array<i64: 12, 48>}, {pipeline_mode = #tpu.pipeline_mode<synchronous>, transform_indices = @transform_2, window_bounds = array<i64: 12, 1>}, {pipeline_mode = #tpu.pipeline_mode<synchronous>, transform_indices = @transform_3, window_bounds = array<i64: 10, 12>}, {pipeline_mode = #tpu.pipeline_mode<synchronous>, transform_indices = @transform_4, window_bounds = array<i64: 10, 1>}, {transform_indices = @transform_5, window_bounds = array<i64: 10, 128>}]} {
    %c0 = arith.constant 0 : index
    %c0_0 = arith.constant 0 : index
    %0 = vector.load %arg2[%c0, %c0_0] : memref<12x48xf32, #tpu.memory_space<vmem>>, vector<12x48xf32>
    %c0_1 = arith.constant 0 : index
    %c0_2 = arith.constant 0 : index
    %1 = vector.load %arg1[%c0_1, %c0_2] : memref<48x128xf32, #tpu.memory_space<vmem>>, vector<48x128xf32>
    %cst = arith.constant dense<0.000000e+00> : vector<12x128xf32>
    %2 = tpu.matmul %0, %1, %cst {dimension_numbers = #tpu.dot_dimension_numbers<[1], [0], [0], [1], [0, 0, 1, 1], [], []>} : vector<12x48xf32>, vector<48x128xf32>, vector<12x128xf32> -> vector<12x128xf32>
    %c0_3 = arith.constant 0 : index
    %c0_4 = arith.constant 0 : index
    %3 = vector.load %arg3[%c0_3, %c0_4] : memref<12x1xf32, #tpu.memory_space<vmem>>, vector<12x1xf32>
    %4 = vector.broadcast %3 : vector<12x1xf32> to vector<12x128xf32>
    %5 = arith.addf %2, %4 : vector<12x128xf32>
    %cst_5 = arith.constant 0.000000e+00 : f32
    %6 = vector.broadcast %cst_5 : f32 to vector<12x128xf32>
    %7 = arith.maximumf %5, %6 : vector<12x128xf32>
    %c0_6 = arith.constant 0 : index
    %c0_7 = arith.constant 0 : index
    %8 = vector.load %arg4[%c0_6, %c0_7] : memref<10x12xf32, #tpu.memory_space<vmem>>, vector<10x12xf32>
    %cst_8 = arith.constant dense<0.000000e+00> : vector<10x128xf32>
    %9 = tpu.matmul %8, %7, %cst_8 {dimension_numbers = #tpu.dot_dimension_numbers<[1], [0], [0], [1], [0, 0, 1, 1], [], []>} : vector<10x12xf32>, vector<12x128xf32>, vector<10x128xf32> -> vector<10x128xf32>
    %c0_9 = arith.constant 0 : index
    %c0_10 = arith.constant 0 : index
    %10 = vector.load %arg5[%c0_9, %c0_10] : memref<10x1xf32, #tpu.memory_space<vmem>>, vector<10x1xf32>
    %11 = vector.broadcast %10 : vector<10x1xf32> to vector<10x128xf32>
    %12 = arith.addf %9, %11 : vector<10x128xf32>
    %cst_11 = arith.constant 0.000000e+00 : f32
    %13 = vector.broadcast %cst_11 : f32 to vector<10x128xf32>
    %14 = arith.maximumf %12, %13 : vector<10x128xf32>
    %c0_12 = arith.constant 0 : index
    %c0_13 = arith.constant 0 : index
    %15 = vector.load %arg6[%c0_12, %c0_13] : memref<10x128xf32, #tpu.memory_space<vmem>>, vector<10x128xf32>
    tpu.vector_store %arg6[%c0_12, %c0_13], %14 {strides = array<i32>} : memref<10x128xf32, #tpu.memory_space<vmem>>, vector<10x128xf32>,
    return
  }
  func.func @transform_0(%arg0: i32) -> (i32, i32) {
    %c0_i32 = arith.constant 0 : i32
    %c0_i32_0 = arith.constant 0 : i32
    return %c0_i32, %arg0 : i32, i32
  }
  func.func @transform_1(%arg0: i32) -> (i32, i32) {
    %c0_i32 = arith.constant 0 : i32
    %c0_i32_0 = arith.constant 0 : i32
    %c0_i32_1 = arith.constant 0 : i32
    return %c0_i32, %c0_i32_0 : i32, i32
  }
  func.func @transform_2(%arg0: i32) -> (i32, i32) {
    %c0_i32 = arith.constant 0 : i32
    %c0_i32_0 = arith.constant 0 : i32
    %c0_i32_1 = arith.constant 0 : i32
    return %c0_i32, %c0_i32_0 : i32, i32
  }
  func.func @transform_3(%arg0: i32) -> (i32, i32) {
    %c0_i32 = arith.constant 0 : i32
    %c0_i32_0 = arith.constant 0 : i32
    %c0_i32_1 = arith.constant 0 : i32
    return %c0_i32, %c0_i32_0 : i32, i32
  }
  func.func @transform_4(%arg0: i32) -> (i32, i32) {
    %c0_i32 = arith.constant 0 : i32
    %c0_i32_0 = arith.constant 0 : i32
    %c0_i32_1 = arith.constant 0 : i32
    return %c0_i32, %c0_i32_0 : i32, i32
  }
  func.func @transform_5(%arg0: i32) -> (i32, i32) {
    %c0_i32 = arith.constant 0 : i32
    %c0_i32_0 = arith.constant 0 : i32
    return %c0_i32, %arg0 : i32, i32
  }
}

</mosaic_0001>

<bundles_post_ra>
// kernel: mul.4
= control target key start
LH: loop header
LB: loop body
LE: loop exit
PB: predicated region body
PF: predicated region fallthrough
CT: control target
= control target key end

     0   :  { %vm46_vm0 = vcmask 15360   ;;  %s105_s24 = smov 6   ;;  %s106_s25 = smov 8   ;;  %vm52_vm1 = vcmask 97360   ;;  %vm58_vm2 = vcmask 80960   ;;  %vm64_vm3 = vcmask 64560   ;;  %s149_s0 = inlined_call_operand.vmem [shape: f32[3,3,2,2], index: 0, kind: input, shape index: {}]   ;;  %s150_s1 = inlined_call_operand.vmem [shape: f32[3,12], index: 1, kind: output, shape index: {}]  }
   0x1   :  { %v91_v0 = vld [vmem:[%s149_s0 + $0x10] sm:$0x3]  ;;  %v94_v1 = vld [vmem:[%s149_s0 + $0xa] sm:$0x3]  ;;  %v97_v2 = vld [vmem:[%s149_s0 + $0x4] sm:$0x3] }
   0x2   :  { %8 = vst [vmem:[#allocation1 + $0x40] sm:$0x3] %v91_v0  ;;  %23 = vst [vmem:[#allocation1 + $0x28] sm:$0x3] %v94_v1  ;;  %v92_v3 = vld [vmem:[%s149_s0 + $0xe] sm:$0x3] }
   0x3   :  { %38 = vst [vmem:[#allocation1 + $0x10] sm:$0x3] %v97_v2  ;;  %v95_v4 = vld [vmem:[%s149_s0 + $0x8] sm:$0x3]  ;;  %13 = vst [vmem:[#allocation1 + $0x38] sm:$0x3] %v92_v3 }
   0x4   :  { %28 = vst [vmem:[#allocation1 + $0x20] sm:$0x3] %v95_v4  ;;  %v98_v5 = vld [vmem:[%s149_s0 + $0x2] sm:$0x3]  ;;  %v93_v6 = vld [vmem:[%s149_s0 + $0xc] sm:$0x3] }
   0x5   :  { %42 = vst [vmem:[#allocation1 + $0x8] sm:$0x3] %v98_v5  ;;  %18 = vst [vmem:[#allocation1 + $0x30] sm:$0x3] %v93_v6  ;;  %v96_v7 = vld [vmem:[%s149_s0 + $0x6] sm:$0x3] }
   0x6   :  { %v43_v8 = vld [vmem:[%s149_s0] sm:$0x3]  ;;  %33 = vst [vmem:[#allocation1 + $0x18] sm:$0x3] %v96_v7  ;;  %s104_s0 = smov 10   ;;  %s107_s26 = smov 4  }
   0x7   :  { %44 = vst [vmem:[#allocation1] sm:$0x3] %v43_v8  ;;  %s108_s27 = smov 2   ;;  %vm70_vm4 = vcmask 48160   ;;  %vm76_vm5 = vcmask 31760  }
   0xa   :  { %v49_v9 = vld [vmem:[#allocation1 + $0x11] ss:$24 sm:$0x7]   ;;  %v55_v11 = vld [vmem:[#allocation1 + $0x10] ss:$24 sm:$0x7]  }
   0xb   :  { %50 = vrot.lane.b32.xlu0 %v49_v9, %s104_s0 }
   0xc   :  { %v61_v10 = vld [vmem:[#allocation1 + $0x9] ss:$24 sm:$0x7]   ;;  %v67_v13 = vld [vmem:[#allocation1 + $0x8] ss:$24 sm:$0x7]  }
   0xd   :  { %62 = vrot.lane.b32.xlu1 %v61_v10, %s105_s24 }
   0xe   :  { %v45_v12 = vld [vmem:[#allocation1] ss:$24 sm:$0x7]   ;;  %v73_v14 = vld [vmem:[#allocation1 + $0x1] ss:$24 sm:$0x7]  }
   0xf   :  { %47 = vst.msk [vmem:[#allocation0] sm:$0x7] %vm46_vm0, %v45_v12   ;;  %56 = vrot.lane.b32.xlu0 %v55_v11, %s106_s25 }
  0x11   :  { %68 = vrot.lane.b32.xlu1 %v67_v13, %s107_s26 }
  0x13   :  { %74 = vrot.lane.b32.xlu0 %v73_v14, %s108_s27 }
  0x7d   :  { %v51_v15 = vpop.permute.xlu0 %50  }
  0x7e   :  { %53 = vst.msk [vmem:[#allocation0] sm:$0x7] %vm52_vm1, %v51_v15  }
  0x7f   :  { %v63_v16 = vpop.permute.xlu1 %62  }
  0x81   :  { %v57_v17 = vpop.permute.xlu0 %56  }
  0x82   :  { %59 = vst.msk [vmem:[#allocation0] sm:$0x7] %vm58_vm2, %v57_v17  }
  0x83   :  { %65 = vst.msk [vmem:[#allocation0] sm:$0x7] %vm64_vm3, %v63_v16   ;;  %v69_v18 = vpop.permute.xlu1 %68  }
  0x84   :  { %71 = vst.msk [vmem:[#allocation0] sm:$0x7] %vm70_vm4, %v69_v18  }
  0x85   :  { %v75_v19 = vpop.permute.xlu0 %74  }
  0x86   :  { %77 = vst.msk [vmem:[#allocation0] sm:$0x7] %vm76_vm5, %v75_v19  }
  0x8d   :  { %v81_v20 = vld [vmem:[#allocation0] sm:$0xf] }
  0x8e   :  { %83 = vst [vmem:[%s150_s1] sm:$0xf] %v81_v20 }

// kernel: tile.8
= control target key start
LH: loop header
LB: loop body
LE: loop exit
PB: predicated region body
PF: predicated region fallthrough
CT: control target
= control target key end

     0   :  { %s22_s0 = inlined_call_operand.vmem [shape: f32[3], index: 0, kind: input, shape index: {}]   ;;  %s23_s1 = inlined_call_operand.vmem [shape: f32[4,3], index: 1, kind: output, shape index: {}]  }
   0x1   :  { %v4_v0 = vld [vmem:[%s22_s0] ss:$0 sm:$0xff] }
   0x2   :  { %5 = vst [vmem:[%s23_s1] sm:$0xf] %v4_v0 }

// kernel: tile.0
= control target key start
LH: loop header
LB: loop body
LE: loop exit
PB: predicated region body
PF: predicated region fallthrough
CT: control target
= control target key end

     0   :  { %vm7_vm0 = vcmask 7168   ;;  %s26_s10 = smov 126   ;;  %s49_s0 = inlined_call_operand.vmem [shape: f32[4,3], index: 0, kind: input, shape index: {}]   ;;  %s50_s1 = inlined_call_operand.vmem [shape: f32[12,1], index: 1, kind: output, shape index: {}]  }
   0x1   :  { %v4_v0 = vld [vmem:[%s49_s0] sm:$0xf]  ;;  %s25_s0 = smov 127  }
   0x2   :  { %5 = vst [vmem:[#allocation0] sm:$0xf] %v4_v0 }
   0x9   :  { %v9_v1 = vld [vmem:[#allocation0] sm:$0xf]  }
   0xa   :  { %v6_v2 = vld [vmem:[#allocation0] sm:$0xf]   ;;  %10 = vrot.lane.b32.xlu0 %v9_v1, %s25_s0 }
   0xb   :  { %8 = vst.msk [vmem:[%s50_s1] ss:$3 sm:$0xf] %vm7_vm0, %v6_v2   ;;  %v15_v3 = vld [vmem:[#allocation0] sm:$0xf]  }
   0xe   :  { %16 = vrot.lane.b32.xlu0 %v15_v3, %s26_s10 }
  0x7c   :  { %v11_v4 = vpop.permute.xlu0 %10  }
  0x7d   :  { %21 = vst.msk [vmem:[%s50_s1 + $0x1] ss:$3 sm:$0xf] %vm7_vm0, %v11_v4  }
  0x80   :  { %v17_v5 = vpop.permute.xlu0 %16  }
  0x81   :  { %22 = vst.msk [vmem:[%s50_s1 + $0x2] ss:$3 sm:$0xf] %vm7_vm0, %v17_v5  }

// kernel: conv_blocks_with_abs.1
= control target key start
LH: loop header
LB: loop body
LE: loop exit
PB: predicated region body
PF: predicated region fallthrough
CT: control target
= control target key end

     0   :  { %vm40_vm0 = vcmask 392192   ;;  %v293_v3 = vmov 0   ;;  %vm138_vm1 = vcmask 97280   ;;  %vm145_vm2 = vcmask 1043456   ;;  %s377_s0 = inlined_call_operand.vmem [shape: f32[48,128], index: 0, kind: input, shape index: {}]   ;;  %s378_s1 = inlined_call_operand.vmem [shape: f32[12,48], index: 1, kind: input, shape index: {}]   ;;  %s379_s2 = inlined_call_operand.vmem [shape: f32[12,1], index: 2, kind: input, shape index: {}]   ;;  %s380_s3 = inlined_call_operand.vmem [shape: f32[10,12], index: 3, kind: input, shape index: {}]   ;;  %s381_s4 = inlined_call_operand.vmem [shape: f32[10,1], index: 4, kind: input, shape index: {}]   ;;  %s382_s5 = inlined_call_operand.vmem [shape: f32[10,128], index: 5, kind: output, shape index: {}]  }
   0x1   :  { %v22_v0 = vld [vmem:[%s377_s0] sm:$0xff]  ;;  %v23_v1 = vld [vmem:[%s377_s0 + $0x8] sm:$0xff]  ;;  %v24_v2 = vld [vmem:[%s377_s0 + $0x10] sm:$0xff]  ;;  %291 = vset.pattern.permute.xlu0 %v293_v3  ;;  %292 = vset.pattern.permute.xlu1 %v293_v3  ;;  %vm294_vm3 = vmmov 1  }
   0x2   :  { %v271_v4 = vpack.c.bf16 %v23_v1, %v22_v0  ;;  %v25_v5 = vld [vmem:[%s377_s0 + $0x18] sm:$0xff]  ;;  %v26_v6 = vld [vmem:[%s377_s0 + $0x20] sm:$0xff]  ;;  %v27_v8 = vld [vmem:[%s377_s0 + $0x28] sm:$0xff] }
   0x3   :  { %v275_v7 = vpack.c.bf16 %v25_v5, %v24_v2  ;;  %v20_v9 = vld [vmem:[%s378_s1] sm:$0xff]  ;;  %v279_v11 = vpack.c.bf16 %v27_v8, %v26_v6  ;;  %v29_v12 = vld [vmem:[%s379_s2 + $0x8] sm:$0xf]  ;;  %vm284_vm4 = vmpackc.low %vm145_vm2, %vm294_vm3 }
   0x4   :  { %v28_v10 = vld [vmem:[%s379_s2] sm:$0xff]  ;;  %272 = vmatprep.subr.bf16.mxu0 %v271_v4  ;;  %261 = vmatprep.mubr.msk.f32.mxu0 %vm40_vm0, %v20_v9  ;;  %v21_v13 = vld [vmem:[%s378_s1 + $0x8] sm:$0xf] }
   0x5   :  { %274 = vmatpush3.bf16.msra.mxu0 %v271_v4  ;;  %32 = vperm.xlu0 %291, %v28_v10   ;;  %v124_v14 = vld [vmem:[%s380_s3] sm:$0xff]  ;;  %v127_v16 = vld [vmem:[%s381_s4 + $0x8] sm:$0x3] }
   0x6   :  { %276 = vmatprep.subr.bf16.mxu0 %v275_v7  ;;  %268 = vmatprep.mubr.msk.f32.mxu1 %vm138_vm1, %v124_v14  ;;  %v126_v15 = vld [vmem:[%s381_s4] sm:$0xff]  ;;  %v125_v26 = vld [vmem:[%s380_s3 + $0x8] sm:$0x3] }
   0x7   :  { %130 = vperm.xlu1 %292, %v126_v15  }
   0x9   :  { %278 = vmatpush3.bf16.msra.mxu0 %v275_v7  ;;  %37 = vperm.xlu0 %291, %v29_v12  }
   0xa   :  { %280 = vmatprep.subr.bf16.mxu0 %v279_v11 }
   0xb   :  { %135 = vperm.xlu1 %292, %v127_v16  }
   0xd   :  { %282 = vmatpush3.bf16.msra.mxu0 %v279_v11 }
  0x10   :  { %262 = vmatmul.mubr.msk.f32.vlgmr.msra.gmra.mrb[0].mxu0 %vm40_vm0, %v21_v13 }
  0x84   :  { %v33_v17 = vpop.permute.xlu0 %32 }
  0x86   :  { %v131_v27 = vpop.permute.xlu1 %130 }
  0x88   :  { %v38_v18 = vpop.permute.xlu0 %37 }
  0x8a   :  { %v136_v28 = vpop.permute.xlu1 %135 }
  0xe3   :  { %v263_v19 = vpop.f32.mrb[0].mxu0 }
  0xe4   :  { %v119_v20 = vadd.f32 %v263_v19, %v38_v18  ;;  %v113_v21 = vpop.f32.mrb[1].mxu0 }
  0xe5   :  { %v114_v22 = vadd.f32 %v113_v21, %v33_v17 }
  0xe6   :  { %v123_v23 = vmax.f32 %v119_v20, 0.0 }
  0xe7   :  { %v122_v24 = vmax.f32 %v114_v22, 0.0 }
  0xe9   :  { %v283_v25 = vpack.c.bf16 %v123_v23, %v122_v24 }
  0xeb   :  { %285 = vmatprep.subr.msk.bf16.mxu1 %vm284_vm4, %v283_v25 }
  0xec   :  { %288 = vmatpush3.bf16.msk.msra.mxu1 %vm284_vm4, %v283_v25 }
  0xef   :  { %269 = vmatmul.mubr.msk.f32.vlgmr.msra.gmra.mrb[0].mxu1 %vm138_vm1, %v125_v26 }
 0x1c2   :  { %v270_v29 = vpop.f32.mrb[0].mxu1 }
 0x1c3   :  { %v221_v30 = vadd.f32 %v270_v29, %v136_v28  ;;  %v215_v31 = vpop.f32.mrb[1].mxu1 }
 0x1c4   :  { %v216_v32 = vadd.f32 %v215_v31, %v131_v27 }
 0x1c5   :  { %v225_v33 = vmax.f32 %v221_v30, 0.0 }
 0x1c6   :  { %v224_v34 = vmax.f32 %v216_v32, 0.0 }
 0x1c7   :  { %227 = vst [vmem:[%s382_s5 + $0x8] sm:$0x3] %v225_v33 }
 0x1c8   :  { %226 = vst [vmem:[%s382_s5] sm:$0xff] %v224_v34 }

</bundles_post_ra>
